<compile_context>
chip_gen: v6e
topology: v6e:2x2x1
jax: 0.10.0
libtpu: 0.0.40
codegen_flags: <defaults>
</compile_context>

<pallas_src>
import math
import functools

import jax
import jax.numpy as jnp
from jax.experimental import pallas as pl
from jax.experimental.pallas import tpu as pltpu


def _gelu_tanh(x):
    return 0.5 * x * (1.0 + jnp.tanh(math.sqrt(2.0 / math.pi)
                                     * (x + 0.044715 * x ** 3)))


def _layer_norm_ref(y, w, b, eps=1e-6):
    # Matches the module's custom LayerNorm: mean over last dim, std with
    # Bessel correction (N-1), eps added to std (NOT torch.nn.LayerNorm).
    n = y.shape[-1]
    mean = jnp.mean(y, axis=-1, keepdims=True)
    var = jnp.sum((y - mean) ** 2, axis=-1, keepdims=True) / (n - 1)
    std = jnp.sqrt(var)
    return w * (y - mean) / (std + eps) + b


def _layer_norm_kernel(y, w, b, eps=1e-6):
    # Same math as _layer_norm_ref, but the divide goes to the EUP.
    n = y.shape[-1]
    mean = jnp.mean(y, axis=-1, keepdims=True)
    var = jnp.sum((y - mean) ** 2, axis=-1, keepdims=True) * (1.0 / (n - 1))
    std = jnp.sqrt(var)
    return w * (y - mean) * pl.reciprocal(std + eps, approx=True) + b


def transformer_block_kernel(x_ref, mask_ref,
                             wqkv_ref, bqkv_ref, woh_ref, bo_ref,
                             ln1w_ref, ln1b_ref,
                             w1_ref, b1_ref, w2_ref, b2_ref,
                             ln2w_ref, ln2b_ref,
                             o_ref,
                             *, num_heads):
    x = x_ref[0]                       # (S, H) f32
    S, H = x.shape
    d_k = H // num_heads
    inv_sqrt_dk = 1.0 / math.sqrt(d_k)

    x_bf = x.astype(jnp.bfloat16)

    # ---- Fused QKV projection: one MXU pass with N = 3H (bf16 in, f32 acc).
    qkv = jnp.dot(x_bf, wqkv_ref[...],
                  preferred_element_type=jnp.float32) + bqkv_ref[...]   # (S, 3H) f32

    # ---- Split heads into a batched (nh, S, d_k) value (value-level stack;
    #      no per-head partial stores to VMEM scratch).
    def head_stack(base):
        return jnp.stack(
            [qkv[:, base + h * d_k: base + (h + 1) * d_k]
             for h in range(num_heads)], axis=0)

    q = head_stack(0).astype(jnp.bfloat16)        # (nh, S, dk)
    k = head_stack(H).astype(jnp.bfloat16)        # (nh, S, dk)
    v = head_stack(2 * H).astype(jnp.bfloat16)    # (nh, S, dk)

    # ---- Scaled dot-product attention, batched over heads.
    scores = jnp.einsum('hqd,hkd->hqk', q, k,
                        preferred_element_type=jnp.float32) * inv_sqrt_dk  # (nh,S,S)

    # Mask compare computed once, broadcast over heads (exact masked_fill
    # semantics, including the degenerate all-masked-row -> uniform case).
    masked = (mask_ref[0] == 0)                   # (S, S) bool
    scores = jnp.where(masked[None, :, :], -1e9, scores)

    scores = scores - jnp.max(scores, axis=-1, keepdims=True)
    e = jnp.exp(scores)
    p_attn = e * pl.reciprocal(jnp.sum(e, axis=-1, keepdims=True), approx=True)

    ctx = jnp.einsum('hqk,hkd->hqd', p_attn.astype(jnp.bfloat16), v,
                     preferred_element_type=jnp.float32)                  # (nh,S,dk)

    # ---- Output projection: head-concat folded into a batched matmul + sum
    #      over heads (mathematically identical to concat(ctx) @ W_o).
    proj = jnp.einsum('hsd,hdo->hso', ctx.astype(jnp.bfloat16), woh_ref[...],
                      preferred_element_type=jnp.float32)                 # (nh,S,H)
    attn_out = jnp.sum(proj, axis=0) + bo_ref[...]                        # (S, H)

    # ---- Residual + LayerNorm 1 (f32).
    y = _layer_norm_kernel(x + attn_out, ln1w_ref[...], ln1b_ref[...])

    # ---- Position-wise FFN with tanh-GELU (bf16 matmuls, f32 accumulate).
    h1 = jnp.dot(y.astype(jnp.bfloat16), w1_ref[...],
                 preferred_element_type=jnp.float32) + b1_ref[...]
    g = _gelu_tanh(h1)
    h2 = jnp.dot(g.astype(jnp.bfloat16), w2_ref[...],
                 preferred_element_type=jnp.float32) + b2_ref[...]

    # ---- Residual + LayerNorm 2, single lane-dense (S, H) store.
    o_ref[0] = _layer_norm_kernel(y + h2, ln2w_ref[...], ln2b_ref[...])


def transformer_block(x, mask, params, num_heads):
    B, S, H = x.shape
    d_k = H // num_heads
    Dff = params["w1"].shape[1]

    # Host-side weight prep: fused QKV weight/bias, per-head output-projection
    # weight, bf16 matmul weights (halves weight HBM/VMEM traffic).
    wqkv = jnp.concatenate([params["wq"], params["wk"], params["wv"]],
                           axis=1).astype(jnp.bfloat16)                # (H, 3H)
    bqkv = jnp.concatenate([params["bq"], params["bk"], params["bv"]],
                           axis=1)                                     # (1, 3H) f32
    wo_h = params["wo"].reshape(num_heads, d_k, H).astype(jnp.bfloat16)  # (nh,dk,H)
    w1 = params["w1"].astype(jnp.bfloat16)
    w2 = params["w2"].astype(jnp.bfloat16)
    mask_bf = mask.astype(jnp.bfloat16)

    # Grid-invariant params: unblocked, fully VMEM-resident (single-buffered,
    # no per-grid-step double-buffer DMA).
    def vmem():
        return pl.BlockSpec(memory_space=pltpu.MemorySpace.VMEM)

    in_specs = [
        pl.BlockSpec((1, S, H), lambda b: (b, 0, 0)),   # x (per-batch tile)
        pl.BlockSpec((1, S, S), lambda b: (b, 0, 0)),   # mask (per-batch tile)
        vmem(), vmem(),                                 # wqkv, bqkv
        vmem(), vmem(),                                 # wo_h, bo
        vmem(), vmem(),                                 # ln1 w, b
        vmem(), vmem(),                                 # w1, b1
        vmem(), vmem(),                                 # w2, b2
        vmem(), vmem(),                                 # ln2 w, b
    ]

    flops = B * (2 * S * H * 3 * H            # fused QKV
                 + 2 * num_heads * S * S * d_k  # scores
                 + 2 * num_heads * S * S * d_k  # p_attn @ v
                 + 2 * S * H * H              # output projection
                 + 2 * S * H * Dff            # FFN up
                 + 2 * S * Dff * H)           # FFN down
    transcendentals = B * (num_heads * S * S + S * Dff)
    param_bytes = (wqkv.size + wo_h.size + w1.size + w2.size) * 2 + \
                  (bqkv.size + params["bo"].size + params["b1"].size +
                   params["b2"].size + params["ln1w"].size + params["ln1b"].size +
                   params["ln2w"].size + params["ln2b"].size) * 4
    bytes_accessed = int(2 * x.size * 4 + mask.size * 2 + param_bytes)
    cost = pl.CostEstimate(flops=int(flops),
                           transcendentals=int(transcendentals),
                           bytes_accessed=bytes_accessed)

    kernel = functools.partial(transformer_block_kernel, num_heads=num_heads)

    return pl.pallas_call(
        kernel,
        out_shape=jax.ShapeDtypeStruct((B, S, H), jnp.float32),
        grid_spec=pltpu.PrefetchScalarGridSpec(
            num_scalar_prefetch=0,
            grid=(B,),
            in_specs=in_specs,
            out_specs=pl.BlockSpec((1, S, H), lambda b: (b, 0, 0)),
        ),
        compiler_params=pltpu.CompilerParams(
            dimension_semantics=("parallel",),
            vmem_limit_bytes=64 * 1024 * 1024),
        cost_estimate=cost,
    )(x, mask_bf, wqkv, bqkv, wo_h, params["bo"],
      params["ln1w"], params["ln1b"],
      w1, params["b1"], w2, params["b2"],
      params["ln2w"], params["ln2b"])


def reference_block(x, mask, p, num_heads):
    """Pure-JAX (f32) mirror of the PyTorch forward (eval mode)."""
    B, S, H = x.shape
    d_k = H // num_heads

    q = x @ p["wq"] + p["bq"]
    k = x @ p["wk"] + p["bk"]
    v = x @ p["wv"] + p["bv"]
    q = q.reshape(B, S, num_heads, d_k).transpose(0, 2, 1, 3)
    k = k.reshape(B, S, num_heads, d_k).transpose(0, 2, 1, 3)
    v = v.reshape(B, S, num_heads, d_k).transpose(0, 2, 1, 3)

    scores = jnp.einsum("bhqd,bhkd->bhqk", q, k) / math.sqrt(d_k)
    scores = jnp.where(mask[:, None, :, :] == 0, -1e9, scores)
    p_attn = jax.nn.softmax(scores, axis=-1)
    attn = jnp.einsum("bhqk,bhkd->bhqd", p_attn, v)
    attn = attn.transpose(0, 2, 1, 3).reshape(B, S, H)
    attn = attn @ p["wo"] + p["bo"]

    y = _layer_norm_ref(x + attn, p["ln1w"], p["ln1b"])

    h1 = y @ p["w1"] + p["b1"]
    h2 = _gelu_tanh(h1) @ p["w2"] + p["b2"]
    return _layer_norm_ref(y + h2, p["ln2w"], p["ln2b"])


def init_params(key, hidden, d_ff):
    ks = jax.random.split(key, 12)

    def lin(kw, kb, fan_in, fan_out):
        bound = 1.0 / math.sqrt(fan_in)
        w = jax.random.uniform(kw, (fan_in, fan_out), jnp.float32, -bound, bound)
        b = jax.random.uniform(kb, (1, fan_out), jnp.float32, -bound, bound)
        return w, b

    p = {}
    p["wq"], p["bq"] = lin(ks[0], ks[1], hidden, hidden)
    p["wk"], p["bk"] = lin(ks[2], ks[3], hidden, hidden)
    p["wv"], p["bv"] = lin(ks[4], ks[5], hidden, hidden)
    p["wo"], p["bo"] = lin(ks[6], ks[7], hidden, hidden)
    p["w1"], p["b1"] = lin(ks[8], ks[9], hidden, d_ff)
    p["w2"], p["b2"] = lin(ks[10], ks[11], d_ff, hidden)
    p["ln1w"] = jnp.ones((1, hidden), jnp.float32)
    p["ln1b"] = jnp.zeros((1, hidden), jnp.float32)
    p["ln2w"] = jnp.ones((1, hidden), jnp.float32)
    p["ln2b"] = jnp.zeros((1, hidden), jnp.float32)
    return p


if __name__ == "__main__":
    B, S, hidden, heads = 2, 8, 32, 4
    d_ff = 4 * hidden

    key = jax.random.PRNGKey(0)
    kx, kmask, kparam = jax.random.split(key, 3)

    x = jax.random.normal(kx, (B, S, hidden), jnp.float32)
    mask = (jax.random.uniform(kmask, (B, S, S)) > 0.2).astype(jnp.float32)
    params = init_params(kparam, hidden, d_ff)

    out = transformer_block(x, mask, params, heads)
    out = jax.block_until_ready(out)

    ref = reference_block(x, mask, params, heads)
    assert out.shape == (B, S, hidden)
    # bf16 MXU matmuls + approximate (EUP) reciprocals => relaxed tolerance
    # vs. the pure-f32 reference.
    assert jnp.allclose(out, ref, atol=5e-2, rtol=5e-2), (
        float(jnp.max(jnp.abs(out - ref))))

    print("KERNEL_OK")
</pallas_src>

<mosaic_0001>
module attributes {stable_mosaic.version = 11 : i64} {
  func.func @transformer_block_kernel(%arg0: i32, %arg1: memref<1x8x32xf32, #tpu.memory_space<vmem>>, %arg2: memref<1x8x8xbf16, #tpu.memory_space<vmem>>, %arg3: memref<32x96xbf16, #tpu.memory_space<vmem>>, %arg4: memref<1x96xf32, #tpu.memory_space<vmem>>, %arg5: memref<4x8x32xbf16, #tpu.memory_space<vmem>>, %arg6: memref<1x32xf32, #tpu.memory_space<vmem>>, %arg7: memref<1x32xf32, #tpu.memory_space<vmem>>, %arg8: memref<1x32xf32, #tpu.memory_space<vmem>>, %arg9: memref<32x128xbf16, #tpu.memory_space<vmem>>, %arg10: memref<1x128xf32, #tpu.memory_space<vmem>>, %arg11: memref<128x32xbf16, #tpu.memory_space<vmem>>, %arg12: memref<1x32xf32, #tpu.memory_space<vmem>>, %arg13: memref<1x32xf32, #tpu.memory_space<vmem>>, %arg14: memref<1x32xf32, #tpu.memory_space<vmem>>, %arg15: memref<1x8x32xf32, #tpu.memory_space<vmem>>) attributes {dimension_semantics = [#tpu.dimension_semantics<parallel>], iteration_bounds = array<i64: 2>, scalar_prefetch = 0 : i64, scratch_operands = 0 : i64, tpu.core_type = #tpu.core_type<tc>, window_params = [{transform_indices = @transform_0, window_bounds = array<i64: 1, 8, 32>}, {transform_indices = @transform_1, window_bounds = array<i64: 1, 8, 8>}, {pipeline_mode = #tpu.pipeline_mode<synchronous>, transform_indices = @transform_2, window_bounds = array<i64: 32, 96>}, {pipeline_mode = #tpu.pipeline_mode<synchronous>, transform_indices = @transform_3, window_bounds = array<i64: 1, 96>}, {pipeline_mode = #tpu.pipeline_mode<synchronous>, transform_indices = @transform_4, window_bounds = array<i64: 4, 8, 32>}, {pipeline_mode = #tpu.pipeline_mode<synchronous>, transform_indices = @transform_5, window_bounds = array<i64: 1, 32>}, {pipeline_mode = #tpu.pipeline_mode<synchronous>, transform_indices = @transform_6, window_bounds = array<i64: 1, 32>}, {pipeline_mode = #tpu.pipeline_mode<synchronous>, transform_indices = @transform_7, window_bounds = array<i64: 1, 32>}, {pipeline_mode = #tpu.pipeline_mode<synchronous>, transform_indices = @transform_8, window_bounds = array<i64: 32, 128>}, {pipeline_mode = #tpu.pipeline_mode<synchronous>, transform_indices = @transform_9, window_bounds = array<i64: 1, 128>}, {pipeline_mode = #tpu.pipeline_mode<synchronous>, transform_indices = @transform_10, window_bounds = array<i64: 128, 32>}, {pipeline_mode = #tpu.pipeline_mode<synchronous>, transform_indices = @transform_11, window_bounds = array<i64: 1, 32>}, {pipeline_mode = #tpu.pipeline_mode<synchronous>, transform_indices = @transform_12, window_bounds = array<i64: 1, 32>}, {pipeline_mode = #tpu.pipeline_mode<synchronous>, transform_indices = @transform_13, window_bounds = array<i64: 1, 32>}, {transform_indices = @transform_14, window_bounds = array<i64: 1, 8, 32>}]} {
    %c0 = arith.constant 0 : index
    %c0_0 = arith.constant 0 : index
    %c0_1 = arith.constant 0 : index
    %0 = vector.load %arg1[%c0, %c0_0, %c0_1] : memref<1x8x32xf32, #tpu.memory_space<vmem>>, vector<1x8x32xf32>
    %1 = vector.shape_cast %0 : vector<1x8x32xf32> to vector<8x32xf32>
    %2 = arith.truncf %1 : vector<8x32xf32> to vector<8x32xbf16>
    %c0_2 = arith.constant 0 : index
    %c0_3 = arith.constant 0 : index
    %3 = vector.load %arg3[%c0_2, %c0_3] : memref<32x96xbf16, #tpu.memory_space<vmem>>, vector<32x96xbf16>
    %cst = arith.constant dense<0.000000e+00> : vector<8x96xf32>
    %4 = tpu.matmul %2, %3, %cst {dimension_numbers = #tpu.dot_dimension_numbers<[1], [0], [0], [1], [0, 0, 1, 1], [], []>} : vector<8x32xbf16>, vector<32x96xbf16>, vector<8x96xf32> -> vector<8x96xf32>
    %c0_4 = arith.constant 0 : index
    %c0_5 = arith.constant 0 : index
    %5 = vector.load %arg4[%c0_4, %c0_5] : memref<1x96xf32, #tpu.memory_space<vmem>>, vector<1x96xf32>
    %6 = vector.broadcast %5 : vector<1x96xf32> to vector<8x96xf32>
    %7 = arith.addf %4, %6 : vector<8x96xf32>
    %8 = vector.extract_strided_slice %7 {offsets = [0, 0], sizes = [8, 8], strides = [1, 1]} : vector<8x96xf32> to vector<8x8xf32>
    %9 = vector.extract_strided_slice %7 {offsets = [0, 8], sizes = [8, 8], strides = [1, 1]} : vector<8x96xf32> to vector<8x8xf32>
    %10 = vector.extract_strided_slice %7 {offsets = [0, 16], sizes = [8, 8], strides = [1, 1]} : vector<8x96xf32> to vector<8x8xf32>
    %11 = vector.extract_strided_slice %7 {offsets = [0, 24], sizes = [8, 8], strides = [1, 1]} : vector<8x96xf32> to vector<8x8xf32>
    %12 = vector.shape_cast %8 : vector<8x8xf32> to vector<1x8x8xf32>
    %13 = vector.shape_cast %9 : vector<8x8xf32> to vector<1x8x8xf32>
    %14 = vector.shape_cast %10 : vector<8x8xf32> to vector<1x8x8xf32>
    %15 = vector.shape_cast %11 : vector<8x8xf32> to vector<1x8x8xf32>
    %16 = tpu.concatenate %12, %13, %14, %15 in 0 : vector<1x8x8xf32>, vector<1x8x8xf32>, vector<1x8x8xf32>, vector<1x8x8xf32> -> vector<4x8x8xf32>
    %17 = arith.truncf %16 : vector<4x8x8xf32> to vector<4x8x8xbf16>
    %18 = vector.extract_strided_slice %7 {offsets = [0, 32], sizes = [8, 8], strides = [1, 1]} : vector<8x96xf32> to vector<8x8xf32>
    %19 = vector.extract_strided_slice %7 {offsets = [0, 40], sizes = [8, 8], strides = [1, 1]} : vector<8x96xf32> to vector<8x8xf32>
    %20 = vector.extract_strided_slice %7 {offsets = [0, 48], sizes = [8, 8], strides = [1, 1]} : vector<8x96xf32> to vector<8x8xf32>
    %21 = vector.extract_strided_slice %7 {offsets = [0, 56], sizes = [8, 8], strides = [1, 1]} : vector<8x96xf32> to vector<8x8xf32>
    %22 = vector.shape_cast %18 : vector<8x8xf32> to vector<1x8x8xf32>
    %23 = vector.shape_cast %19 : vector<8x8xf32> to vector<1x8x8xf32>
    %24 = vector.shape_cast %20 : vector<8x8xf32> to vector<1x8x8xf32>
    %25 = vector.shape_cast %21 : vector<8x8xf32> to vector<1x8x8xf32>
    %26 = tpu.concatenate %22, %23, %24, %25 in 0 : vector<1x8x8xf32>, vector<1x8x8xf32>, vector<1x8x8xf32>, vector<1x8x8xf32> -> vector<4x8x8xf32>
    %27 = arith.truncf %26 : vector<4x8x8xf32> to vector<4x8x8xbf16>
    %28 = vector.extract_strided_slice %7 {offsets = [0, 64], sizes = [8, 8], strides = [1, 1]} : vector<8x96xf32> to vector<8x8xf32>
    %29 = vector.extract_strided_slice %7 {offsets = [0, 72], sizes = [8, 8], strides = [1, 1]} : vector<8x96xf32> to vector<8x8xf32>
    %30 = vector.extract_strided_slice %7 {offsets = [0, 80], sizes = [8, 8], strides = [1, 1]} : vector<8x96xf32> to vector<8x8xf32>
    %31 = vector.extract_strided_slice %7 {offsets = [0, 88], sizes = [8, 8], strides = [1, 1]} : vector<8x96xf32> to vector<8x8xf32>
    %32 = vector.shape_cast %28 : vector<8x8xf32> to vector<1x8x8xf32>
    %33 = vector.shape_cast %29 : vector<8x8xf32> to vector<1x8x8xf32>
    %34 = vector.shape_cast %30 : vector<8x8xf32> to vector<1x8x8xf32>
    %35 = vector.shape_cast %31 : vector<8x8xf32> to vector<1x8x8xf32>
    %36 = tpu.concatenate %32, %33, %34, %35 in 0 : vector<1x8x8xf32>, vector<1x8x8xf32>, vector<1x8x8xf32>, vector<1x8x8xf32> -> vector<4x8x8xf32>
    %37 = arith.truncf %36 : vector<4x8x8xf32> to vector<4x8x8xbf16>
    "tpu.trace_start"() <{level = 10 : i32, message = "hqd,hkd->hqk"}> : () -> ()
    %cst_6 = arith.constant dense<0.000000e+00> : vector<4x8x8xf32>
    %38 = tpu.matmul %17, %27, %cst_6 {dimension_numbers = #tpu.dot_dimension_numbers<[2], [2], [1], [1], [0, 0, 0, 1, 1, 1], [0], [0]>} : vector<4x8x8xbf16>, vector<4x8x8xbf16>, vector<4x8x8xf32> -> vector<4x8x8xf32>
    "tpu.trace_stop"() : () -> ()
    %cst_7 = arith.constant 0.353553385 : f32
    %39 = vector.broadcast %cst_7 : f32 to vector<4x8x8xf32>
    %40 = arith.mulf %38, %39 : vector<4x8x8xf32>
    %c0_8 = arith.constant 0 : index
    %c0_9 = arith.constant 0 : index
    %c0_10 = arith.constant 0 : index
    %41 = vector.load %arg2[%c0_8, %c0_9, %c0_10] : memref<1x8x8xbf16, #tpu.memory_space<vmem>>, vector<1x8x8xbf16>
    %42 = vector.shape_cast %41 : vector<1x8x8xbf16> to vector<8x8xbf16>
    %cst_11 = arith.constant 0.000000e+00 : bf16
    %43 = vector.broadcast %cst_11 : bf16 to vector<8x8xbf16>
    %44 = arith.cmpf oeq, %42, %43 : vector<8x8xbf16>
    %45 = vector.shape_cast %44 : vector<8x8xi1> to vector<1x8x8xi1>
    %cst_12 = arith.constant -1.000000e+09 : f32
    %46 = vector.shape_cast %45 : vector<1x8x8xi1> to vector<1x8x8xi1>
    %47 = vector.broadcast %46 : vector<1x8x8xi1> to vector<4x8x8xi1>
    %48 = vector.broadcast %cst_12 : f32 to vector<4x8x8xf32>
    %49 = arith.select %47, %48, %40 : vector<4x8x8xi1>, vector<4x8x8xf32>
    %cst_13 = arith.constant dense<0xFF800000> : vector<4x8xf32>
    %50 = vector.multi_reduction <maximumf>, %49, %cst_13 [2] : vector<4x8x8xf32> to vector<4x8xf32>
    %51 = vector.shape_cast %50 : vector<4x8xf32> to vector<4x8x1xf32>
    %52 = vector.broadcast %51 : vector<4x8x1xf32> to vector<4x8x8xf32>
    %53 = arith.subf %49, %52 : vector<4x8x8xf32>
    %54 = math.exp %53 : vector<4x8x8xf32>
    %cst_14 = arith.constant dense<0.000000e+00> : vector<4x8xf32>
    %55 = vector.multi_reduction <add>, %54, %cst_14 [2] : vector<4x8x8xf32> to vector<4x8xf32>
    %56 = vector.shape_cast %55 : vector<4x8xf32> to vector<4x8x1xf32>
    %57 = tpu.reciprocal %56 {approx = true} : vector<4x8x1xf32> -> vector<4x8x1xf32>
    %58 = vector.broadcast %57 : vector<4x8x1xf32> to vector<4x8x8xf32>
    %59 = arith.mulf %54, %58 : vector<4x8x8xf32>
    %60 = arith.truncf %59 : vector<4x8x8xf32> to vector<4x8x8xbf16>
    "tpu.trace_start"() <{level = 10 : i32, message = "hqk,hkd->hqd"}> : () -> ()
    %cst_15 = arith.constant dense<0.000000e+00> : vector<4x8x8xf32>
    %61 = tpu.matmul %60, %37, %cst_15 {dimension_numbers = #tpu.dot_dimension_numbers<[2], [1], [1], [2], [0, 0, 0, 1, 1, 2], [0], [0]>} : vector<4x8x8xbf16>, vector<4x8x8xbf16>, vector<4x8x8xf32> -> vector<4x8x8xf32>
    "tpu.trace_stop"() : () -> ()
    %62 = arith.truncf %61 : vector<4x8x8xf32> to vector<4x8x8xbf16>
    %c0_16 = arith.constant 0 : index
    %c0_17 = arith.constant 0 : index
    %c0_18 = arith.constant 0 : index
    %63 = vector.load %arg5[%c0_16, %c0_17, %c0_18] : memref<4x8x32xbf16, #tpu.memory_space<vmem>>, vector<4x8x32xbf16>
    "tpu.trace_start"() <{level = 10 : i32, message = "hsd,hdo->hso"}> : () -> ()
    %cst_19 = arith.constant dense<0.000000e+00> : vector<4x8x32xf32>
    %64 = tpu.matmul %62, %63, %cst_19 {dimension_numbers = #tpu.dot_dimension_numbers<[2], [1], [1], [2], [0, 0, 0, 1, 1, 2], [0], [0]>} : vector<4x8x8xbf16>, vector<4x8x32xbf16>, vector<4x8x32xf32> -> vector<4x8x32xf32>
    "tpu.trace_stop"() : () -> ()
    %cst_20 = arith.constant dense<0.000000e+00> : vector<8x32xf32>
    %65 = vector.multi_reduction <add>, %64, %cst_20 [0] : vector<4x8x32xf32> to vector<8x32xf32>
    %c0_21 = arith.constant 0 : index
    %c0_22 = arith.constant 0 : index
    %66 = vector.load %arg6[%c0_21, %c0_22] : memref<1x32xf32, #tpu.memory_space<vmem>>, vector<1x32xf32>
    %67 = vector.broadcast %66 : vector<1x32xf32> to vector<8x32xf32>
    %68 = arith.addf %65, %67 : vector<8x32xf32>
    %69 = arith.addf %1, %68 : vector<8x32xf32>
    %c0_23 = arith.constant 0 : index
    %c0_24 = arith.constant 0 : index
    %70 = vector.load %arg7[%c0_23, %c0_24] : memref<1x32xf32, #tpu.memory_space<vmem>>, vector<1x32xf32>
    %c0_25 = arith.constant 0 : index
    %c0_26 = arith.constant 0 : index
    %71 = vector.load %arg8[%c0_25, %c0_26] : memref<1x32xf32, #tpu.memory_space<vmem>>, vector<1x32xf32>
    %cst_27 = arith.constant dense<0.000000e+00> : vector<8xf32>
    %72 = vector.multi_reduction <add>, %69, %cst_27 [1] : vector<8x32xf32> to vector<8xf32>
    %73 = vector.shape_cast %72 : vector<8xf32> to vector<8x1xf32>
    %cst_28 = arith.constant 3.200000e+01 : f32
    %74 = vector.broadcast %cst_28 : f32 to vector<8x1xf32>
    %75 = arith.divf %73, %74 : vector<8x1xf32>
    %76 = vector.broadcast %75 : vector<8x1xf32> to vector<8x32xf32>
    %77 = arith.subf %69, %76 : vector<8x32xf32>
    %78 = arith.mulf %77, %77 : vector<8x32xf32>
    %cst_29 = arith.constant dense<0.000000e+00> : vector<8xf32>
    %79 = vector.multi_reduction <add>, %78, %cst_29 [1] : vector<8x32xf32> to vector<8xf32>
    %80 = vector.shape_cast %79 : vector<8xf32> to vector<8x1xf32>
    %cst_30 = arith.constant 0.0322580636 : f32
    %81 = vector.broadcast %cst_30 : f32 to vector<8x1xf32>
    %82 = arith.mulf %80, %81 : vector<8x1xf32>
    %83 = math.sqrt %82 : vector<8x1xf32>
    %84 = vector.broadcast %75 : vector<8x1xf32> to vector<8x32xf32>
    %85 = arith.subf %69, %84 : vector<8x32xf32>
    %86 = vector.broadcast %70 : vector<1x32xf32> to vector<8x32xf32>
    %87 = arith.mulf %86, %85 : vector<8x32xf32>
    %cst_31 = arith.constant 9.99999997E-7 : f32
    %88 = vector.broadcast %cst_31 : f32 to vector<8x1xf32>
    %89 = arith.addf %83, %88 : vector<8x1xf32>
    %90 = tpu.reciprocal %89 {approx = true} : vector<8x1xf32> -> vector<8x1xf32>
    %91 = vector.broadcast %90 : vector<8x1xf32> to vector<8x32xf32>
    %92 = arith.mulf %87, %91 : vector<8x32xf32>
    %93 = vector.broadcast %71 : vector<1x32xf32> to vector<8x32xf32>
    %94 = arith.addf %92, %93 : vector<8x32xf32>
    %95 = arith.truncf %94 : vector<8x32xf32> to vector<8x32xbf16>
    %c0_32 = arith.constant 0 : index
    %c0_33 = arith.constant 0 : index
    %96 = vector.load %arg9[%c0_32, %c0_33] : memref<32x128xbf16, #tpu.memory_space<vmem>>, vector<32x128xbf16>
    %cst_34 = arith.constant dense<0.000000e+00> : vector<8x128xf32>
    %97 = tpu.matmul %95, %96, %cst_34 {dimension_numbers = #tpu.dot_dimension_numbers<[1], [0], [0], [1], [0, 0, 1, 1], [], []>} : vector<8x32xbf16>, vector<32x128xbf16>, vector<8x128xf32> -> vector<8x128xf32>
    %c0_35 = arith.constant 0 : index
    %c0_36 = arith.constant 0 : index
    %98 = vector.load %arg10[%c0_35, %c0_36] : memref<1x128xf32, #tpu.memory_space<vmem>>, vector<1x128xf32>
    %99 = vector.broadcast %98 : vector<1x128xf32> to vector<8x128xf32>
    %100 = arith.addf %97, %99 : vector<8x128xf32>
    %cst_37 = arith.constant 5.000000e-01 : f32
    %101 = vector.broadcast %cst_37 : f32 to vector<8x128xf32>
    %102 = arith.mulf %101, %100 : vector<8x128xf32>
    %103 = arith.mulf %100, %100 : vector<8x128xf32>
    %104 = arith.mulf %100, %103 : vector<8x128xf32>
    %cst_38 = arith.constant 4.471500e-02 : f32
    %105 = vector.broadcast %cst_38 : f32 to vector<8x128xf32>
    %106 = arith.mulf %105, %104 : vector<8x128xf32>
    %107 = arith.addf %100, %106 : vector<8x128xf32>
    %cst_39 = arith.constant 0.797884583 : f32
    %108 = vector.broadcast %cst_39 : f32 to vector<8x128xf32>
    %109 = arith.mulf %108, %107 : vector<8x128xf32>
    %110 = math.tanh %109 : vector<8x128xf32>
    %cst_40 = arith.constant 1.000000e+00 : f32
    %111 = vector.broadcast %cst_40 : f32 to vector<8x128xf32>
    %112 = arith.addf %111, %110 : vector<8x128xf32>
    %113 = arith.mulf %102, %112 : vector<8x128xf32>
    %114 = arith.truncf %113 : vector<8x128xf32> to vector<8x128xbf16>
    %c0_41 = arith.constant 0 : index
    %c0_42 = arith.constant 0 : index
    %115 = vector.load %arg11[%c0_41, %c0_42] : memref<128x32xbf16, #tpu.memory_space<vmem>>, vector<128x32xbf16>
    %cst_43 = arith.constant dense<0.000000e+00> : vector<8x32xf32>
    %116 = tpu.matmul %114, %115, %cst_43 {dimension_numbers = #tpu.dot_dimension_numbers<[1], [0], [0], [1], [0, 0, 1, 1], [], []>} : vector<8x128xbf16>, vector<128x32xbf16>, vector<8x32xf32> -> vector<8x32xf32>
    %c0_44 = arith.constant 0 : index
    %c0_45 = arith.constant 0 : index
    %117 = vector.load %arg12[%c0_44, %c0_45] : memref<1x32xf32, #tpu.memory_space<vmem>>, vector<1x32xf32>
    %118 = vector.broadcast %117 : vector<1x32xf32> to vector<8x32xf32>
    %119 = arith.addf %116, %118 : vector<8x32xf32>
    %120 = arith.addf %94, %119 : vector<8x32xf32>
    %c0_46 = arith.constant 0 : index
    %c0_47 = arith.constant 0 : index
    %121 = vector.load %arg13[%c0_46, %c0_47] : memref<1x32xf32, #tpu.memory_space<vmem>>, vector<1x32xf32>
    %c0_48 = arith.constant 0 : index
    %c0_49 = arith.constant 0 : index
    %122 = vector.load %arg14[%c0_48, %c0_49] : memref<1x32xf32, #tpu.memory_space<vmem>>, vector<1x32xf32>
    %cst_50 = arith.constant dense<0.000000e+00> : vector<8xf32>
    %123 = vector.multi_reduction <add>, %120, %cst_50 [1] : vector<8x32xf32> to vector<8xf32>
    %124 = vector.shape_cast %123 : vector<8xf32> to vector<8x1xf32>
    %cst_51 = arith.constant 3.200000e+01 : f32
    %125 = vector.broadcast %cst_51 : f32 to vector<8x1xf32>
    %126 = arith.divf %124, %125 : vector<8x1xf32>
    %127 = vector.broadcast %126 : vector<8x1xf32> to vector<8x32xf32>
    %128 = arith.subf %120, %127 : vector<8x32xf32>
    %129 = arith.mulf %128, %128 : vector<8x32xf32>
    %cst_52 = arith.constant dense<0.000000e+00> : vector<8xf32>
    %130 = vector.multi_reduction <add>, %129, %cst_52 [1] : vector<8x32xf32> to vector<8xf32>
    %131 = vector.shape_cast %130 : vector<8xf32> to vector<8x1xf32>
    %cst_53 = arith.constant 0.0322580636 : f32
    %132 = vector.broadcast %cst_53 : f32 to vector<8x1xf32>
    %133 = arith.mulf %131, %132 : vector<8x1xf32>
    %134 = math.sqrt %133 : vector<8x1xf32>
    %135 = vector.broadcast %126 : vector<8x1xf32> to vector<8x32xf32>
    %136 = arith.subf %120, %135 : vector<8x32xf32>
    %137 = vector.broadcast %121 : vector<1x32xf32> to vector<8x32xf32>
    %138 = arith.mulf %137, %136 : vector<8x32xf32>
    %cst_54 = arith.constant 9.99999997E-7 : f32
    %139 = vector.broadcast %cst_54 : f32 to vector<8x1xf32>
    %140 = arith.addf %134, %139 : vector<8x1xf32>
    %141 = tpu.reciprocal %140 {approx = true} : vector<8x1xf32> -> vector<8x1xf32>
    %142 = vector.broadcast %141 : vector<8x1xf32> to vector<8x32xf32>
    %143 = arith.mulf %138, %142 : vector<8x32xf32>
    %144 = vector.broadcast %122 : vector<1x32xf32> to vector<8x32xf32>
    %145 = arith.addf %143, %144 : vector<8x32xf32>
    %c0_55 = arith.constant 0 : index
    %c0_56 = arith.constant 0 : index
    %c0_57 = arith.constant 0 : index
    %146 = vector.load %arg15[%c0_55, %c0_56, %c0_57] : memref<1x8x32xf32, #tpu.memory_space<vmem>>, vector<1x8x32xf32>
    %147 = vector.shape_cast %146 : vector<1x8x32xf32> to vector<8x32xf32>
    %148 = vector.shape_cast %145 : vector<8x32xf32> to vector<1x8x32xf32>
    tpu.vector_store %arg15[%c0_55, %c0_56, %c0_57], %148 {strides = array<i32>} : memref<1x8x32xf32, #tpu.memory_space<vmem>>, vector<1x8x32xf32>,
    return
  }
  func.func @transform_0(%arg0: i32) -> (i32, i32, i32) {
    %c0_i32 = arith.constant 0 : i32
    %c0_i32_0 = arith.constant 0 : i32
    %c0_i32_1 = arith.constant 0 : i32
    return %arg0, %c0_i32, %c0_i32_0 : i32, i32, i32
  }
  func.func @transform_1(%arg0: i32) -> (i32, i32, i32) {
    %c0_i32 = arith.constant 0 : i32
    %c0_i32_0 = arith.constant 0 : i32
    %c0_i32_1 = arith.constant 0 : i32
    return %arg0, %c0_i32, %c0_i32_0 : i32, i32, i32
  }
  func.func @transform_2(%arg0: i32) -> (i32, i32) {
    %c0_i32 = arith.constant 0 : i32
    %c0_i32_0 = arith.constant 0 : i32
    %c0_i32_1 = arith.constant 0 : i32
    return %c0_i32, %c0_i32_0 : i32, i32
  }
  func.func @transform_3(%arg0: i32) -> (i32, i32) {
    %c0_i32 = arith.constant 0 : i32
    %c0_i32_0 = arith.constant 0 : i32
    %c0_i32_1 = arith.constant 0 : i32
    return %c0_i32, %c0_i32_0 : i32, i32
  }
  func.func @transform_4(%arg0: i32) -> (i32, i32, i32) {
    %c0_i32 = arith.constant 0 : i32
    %c0_i32_0 = arith.constant 0 : i32
    %c0_i32_1 = arith.constant 0 : i32
    %c0_i32_2 = arith.constant 0 : i32
    return %c0_i32, %c0_i32_0, %c0_i32_1 : i32, i32, i32
  }
  func.func @transform_5(%arg0: i32) -> (i32, i32) {
    %c0_i32 = arith.constant 0 : i32
    %c0_i32_0 = arith.constant 0 : i32
    %c0_i32_1 = arith.constant 0 : i32
    return %c0_i32, %c0_i32_0 : i32, i32
  }
  func.func @transform_6(%arg0: i32) -> (i32, i32) {
    %c0_i32 = arith.constant 0 : i32
    %c0_i32_0 = arith.constant 0 : i32
    %c0_i32_1 = arith.constant 0 : i32
    return %c0_i32, %c0_i32_0 : i32, i32
  }
  func.func @transform_7(%arg0: i32) -> (i32, i32) {
    %c0_i32 = arith.constant 0 : i32
    %c0_i32_0 = arith.constant 0 : i32
    %c0_i32_1 = arith.constant 0 : i32
    return %c0_i32, %c0_i32_0 : i32, i32
  }
  func.func @transform_8(%arg0: i32) -> (i32, i32) {
    %c0_i32 = arith.constant 0 : i32
    %c0_i32_0 = arith.constant 0 : i32
    %c0_i32_1 = arith.constant 0 : i32
    return %c0_i32, %c0_i32_0 : i32, i32
  }
  func.func @transform_9(%arg0: i32) -> (i32, i32) {
    %c0_i32 = arith.constant 0 : i32
    %c0_i32_0 = arith.constant 0 : i32
    %c0_i32_1 = arith.constant 0 : i32
    return %c0_i32, %c0_i32_0 : i32, i32
  }
  func.func @transform_10(%arg0: i32) -> (i32, i32) {
    %c0_i32 = arith.constant 0 : i32
    %c0_i32_0 = arith.constant 0 : i32
    %c0_i32_1 = arith.constant 0 : i32
    return %c0_i32, %c0_i32_0 : i32, i32
  }
  func.func @transform_11(%arg0: i32) -> (i32, i32) {
    %c0_i32 = arith.constant 0 : i32
    %c0_i32_0 = arith.constant 0 : i32
    %c0_i32_1 = arith.constant 0 : i32
    return %c0_i32, %c0_i32_0 : i32, i32
  }
  func.func @transform_12(%arg0: i32) -> (i32, i32) {
    %c0_i32 = arith.constant 0 : i32
    %c0_i32_0 = arith.constant 0 : i32
    %c0_i32_1 = arith.constant 0 : i32
    return %c0_i32, %c0_i32_0 : i32, i32
  }
  func.func @transform_13(%arg0: i32) -> (i32, i32) {
    %c0_i32 = arith.constant 0 : i32
    %c0_i32_0 = arith.constant 0 : i32
    %c0_i32_1 = arith.constant 0 : i32
    return %c0_i32, %c0_i32_0 : i32, i32
  }
  func.func @transform_14(%arg0: i32) -> (i32, i32, i32) {
    %c0_i32 = arith.constant 0 : i32
    %c0_i32_0 = arith.constant 0 : i32
    %c0_i32_1 = arith.constant 0 : i32
    return %arg0, %c0_i32, %c0_i32_0 : i32, i32, i32
  }
}

</mosaic_0001>

<bundles_post_ra>
// kernel: tpu_custom_call.1
= control target key start
LH: loop header
LB: loop body
LE: loop exit
PB: predicated region body
PF: predicated region fallthrough
CT: control target
= control target key end

     0   :  { %s2302_s0 = inlined_call_operand.vmem [shape: f32[2,8,32], index: 0, kind: input, shape index: {}]   ;;  %s2303_s1 = inlined_call_operand.vmem [shape: bf16[2,8,8], index: 1, kind: input, shape index: {}]   ;;  %s2304_s2 = inlined_call_operand.vmem [shape: bf16[32,96], index: 2, kind: input, shape index: {}]   ;;  %s2305_s3 = inlined_call_operand.vmem [shape: f32[1,96], index: 3, kind: input, shape index: {}]   ;;  %s2306_s4 = inlined_call_operand.vmem [shape: bf16[4,8,32], index: 4, kind: input, shape index: {}]   ;;  %s2307_s5 = inlined_call_operand.vmem [shape: f32[1,32], index: 5, kind: input, shape index: {}]   ;;  %s2308_s6 = inlined_call_operand.vmem [shape: f32[1,32], index: 6, kind: input, shape index: {}]   ;;  %s2309_s7 = inlined_call_operand.vmem [shape: f32[1,32], index: 7, kind: input, shape index: {}]   ;;  %s2310_s8 = inlined_call_operand.vmem [shape: bf16[32,128], index: 8, kind: input, shape index: {}]   ;;  %s2311_s9 = inlined_call_operand.vmem [shape: f32[1,128], index: 9, kind: input, shape index: {}]   ;;  %s2312_s10 = inlined_call_operand.vmem [shape: bf16[128,32], index: 10, kind: input, shape index: {}]   ;;  %s2313_s11 = inlined_call_operand.vmem [shape: f32[1,32], index: 11, kind: input, shape index: {}]   ;;  %s2314_s12 = inlined_call_operand.vmem [shape: f32[1,32], index: 12, kind: input, shape index: {}]   ;;  %s2315_s13 = inlined_call_operand.vmem [shape: f32[1,32], index: 13, kind: input, shape index: {}]   ;;  %s2316_s14 = inlined_call_operand.hbm [shape: f32[2,8,32], index: 14, kind: output, shape index: {}]  }
   0x1   :  { %2317 = sst [smem:[#allocation5_spill]] %s2302_s0 }
   0x2   :  { %2318 = sst [smem:[#allocation6_spill]] %s2303_s1 }
   0x3   :  { %2319 = sst [smem:[#allocation7_spill]] %s2304_s2 }
   0x4   :  { %2320 = sst [smem:[#allocation8_spill]] %s2305_s3 }
   0x5   :  { %2321 = sst [smem:[#allocation9_spill]] %s2306_s4 }
   0x6   :  { %19 = vsyncpa [#allocation3], 0 }
   0x7   :  { %21 = vsyncpa [#allocation3 + $0x1], 0  ;;  %s1998_s29 = smov 0   ;;  %s2000_s30 = smov 0  }
   0x8   :  { %s2002_s15 = smov 0   ;;  %s2004_s16 = smov 0  }
   0x9 LB: > { %s2019_s17 = sadd.s32 4294967295, %s1912_s16   ;;  %s1575_s18 = sadd.s32 4294967294, %s1912_s16   ;;  %s1912_s16 = sphi %s2004_s16, %s2334_s16   ;;  %s1908_s15 = sphi %s2002_s15, %s2333_s15   ;;  %s1904_s30 = sphi %s2000_s30, %s2332_s30   ;;  %s1900_s29 = sphi %s1998_s29, %s2331_s29  }
   0xa   : > { %s2023_s19 = sadd.s32 1, %s1912_s16   ;;  %s338_s20 = sadd.s32 1, %s1908_s15 }
   0xb   : > { %s335_s21 = ssub.s32 %s1912_s16, %s2023_s19  ;;  %p348_p0 = scmp.ne.s32.totalorder %s1908_s15, %s1904_s30 }
   0xc   : > { %p336_p1 = scmp.eq.s32.totalorder %s335_s21, 0  ;;  %p349_p2 = scmp.eq.s32.totalorder %s2019_s17, 1 }
   0xd   : > { %p354_p3 = scmp.ne.s32.totalorder %s1904_s30, %s1900_s29  ;;  %p355_p4 = scmp.eq.s32.totalorder %s1575_s18, 1 }
   0xe   : > { %s2034_s22 = scalar_select %p336_p1, %s1908_s15, %s338_s20  }
   0xf   : > { %p2036_p5 = por %p349_p2, %p348_p0  ;;  %p2040_p6 = por %p355_p4, %p354_p3 }
  0x10   : > { %p1578_p7 = scmp.ge.s32.totalorder %s1912_s16, 1  ;;  %p423_p8 = scmp.lt.s32.totalorder %s1912_s16, 3 }
  0x12   : > { %p424_p9 = pnand %p1578_p7, %p423_p8 }
  0x13   : > { %s2324_s2 = sld [smem:[#allocation7_spill]] (!%p424_p9)  ;;  %p472_p10 = scmp.lt.s32.totalorder (!%p424_p9), %s2019_s17, 1 }
  0x14   : > { %427 = sbr.rel (%p424_p9) target bundleno = 2469 (0x9a5), region = 76  ;;  %s2325_s0 = sld [smem:[#allocation5_spill]] (!%p424_p9) }
  0x15   : > { %s2326_s3 = sld [smem:[#allocation8_spill]] (!%p424_p9)  ;;  %s1917_s21 = smov (!%p424_p9), 120  }
  0x16   : > { %s1918_s25 = smov (!%p424_p9), 112   ;;  %s2327_s1 = sld [smem:[#allocation6_spill]] (!%p424_p9) }
  0x17   : > { %s2330_s4 = sld [smem:[#allocation9_spill]] (!%p424_p9) }
  0x19   : > { %v1814_v0 = vld [vmem:[%s2324_s2 + $0x8] sm:$0xff]   ;;  %v1914_v1 = vmov 0.0   ;;  %v1815_v2 = vld [vmem:[%s2324_s2] sm:$0xff]   ;;  %vm1915_vm0 = vmmov 0   ;;  %s2061_s18 = scalar_select %p472_p10, %s2019_s17, 1  ;;  %vm508_vm1 = vcmask 261120  }
  0x1a   : > { %1659 = vmatprep.subr.bf16.mxu1 %v1914_v1  ;;  %1685 = vmatprep.subr.bf16.mxu0 %v1914_v1  ;;  %vm569_vm2 = vcmask 64512   ;;  %v1920_v27 = vmov 0   ;;  %vm831_vm5 = vcmask 1043456  }
  0x1b   : > { %1660 = vmatpush3.bf16.msra.mxu1 %v1814_v0  ;;  %1663 = vmatprep.mubr.msk.bf16.mxu1 %vm1915_vm0, %v1914_v1  ;;  %s1580_s20 = sshll.u32 %s2061_s18, 3  ;;  %v1582_v5 = vld [vmem:[%s2326_s3] ss:$0 sm:$0xff]  ;;  %s1581_s27 = sshll.u32 %s2061_s18, 2 }
  0x1c   : > { %1661 = vmatprep.subr.bf16.mxu1 %v1914_v1  ;;  %1687 = vmatprep.mubr.msk.bf16.mxu0 %vm1915_vm0, %v1914_v1  ;;  %s475_s26 = scalar_lea.vmem %s2325_s0, %s1580_s20  ;;  %s1916_s20 = smov 104  }
  0x1d   : > { %v2068_v3 = vld [vmem:[%s475_s26] sm:$0xff]  ;;  %s1919_s26 = smov 96   ;;  %s1921_s18 = smov 64  }
  0x1e   : > { %v484_v4 = vpack.c.bf16 %v2068_v3, %v2068_v3 }
  0x1f   : > { %1662 = vmatpush3.bf16.msra.mxu1 %v1815_v2 }
  0x20   : > { %1667 = vmatprep.subr.bf16.mxu1 %v1914_v1 }
  0x22   : > { %1664 = vmatmul.mubr.msk.bf16.vlgmr.msra.gmra.mxu1 %vm508_vm1, %v484_v4 }
  0x23   : > { %1669 = vmatprep.mubr.msk.bf16.mxu1 %vm1915_vm0, %v1914_v1 }
  0xe2   : > { %v546_v6 = vpop.f32.mrf.mxu1 }
  0xe3   : > { %v547_v7 = vadd.f32 %v1582_v5, %v546_v6 }
  0xe4   : > { %v1665_v8 = vpop.f32.mrf.mxu1 }
  0xe5   : > { %559 = vrot.lane.b32.xlu1 %v547_v7, %s1916_s20  ;;  %553 = vrot.lane.b32.xlu0 %v547_v7, %s1917_s21  ;;  %v2078_v10 = vpack.c.bf16 %v547_v7, %v547_v7  ;;  %s479_s21 = scalar_lea.vmem %s2327_s1, %s1581_s27  ;;  %s1922_s20 = smov [#allocation2]  }
  0xe6   : > { %v549_v9 = vpop.f32.mrf.mxu1  ;;  %v767_v26 = vld [vmem:[%s479_s21] sm:$0xf]  ;;  %s1856_s21 = sshll.u32 %s1922_s20, 4  ;;  %s1857_s21 = int_to_ptr.vmem [resolvable:$false] %s1856_s21 }
  0xe7   : > { %vm768_vm3 = vcmp.eq.bf16.partialorder %v767_v26, 0 }
  0xe8   : > { %v1666_v11 = vpop.f32.mrf.mxu1  ;;  %v769_v28 = vsel %vm768_vm3, 65537, %v1920_v27 }
  0xe9   : > { %556 = vrot.lane.b32.xlu0 %v547_v7, %s1918_s25  ;;  %567 = vrot.lane.b32.xlu1 %v2078_v10, %s1919_s26  ;;  %v770_v29 = vunpack.c.l.b16 %v769_v28 }
  0xeb   : > { %vm2118_vm4 = vcmp.ne.s32.totalorder %v770_v29, 0 }
 0x157   : > { %v560_v12 = vpop.permute.xlu1 %559  ;;  %v554_v13 = vpop.permute.xlu0 %553 }
 0x158   : > { %v2081_v14 = vpack.c.bf16 %v554_v13, %v554_v13  ;;  %v2084_v17 = vpack.c.bf16 %v560_v12, %v560_v12 }
 0x15a   : > { %617 = vrot.lane.b32.xlu0 %v2081_v14, %s1919_s26 }
 0x15b   : > { %v557_v15 = vpop.permute.xlu0 %556  ;;  %v568_v16 = vpop.permute.xlu1 %567 }
 0x15c   : > { %v2086_v18 = vpack.c.bf16 %v557_v15, %v557_v15  ;;  %v574_v19 = vsel %vm569_vm2, %v568_v16, 0 }
 0x15d   : > { %1668 = vmatpush3.bf16.xpose.msra.mxu1 %v574_v19 }
 0x15e   : > { %715 = vrot.lane.b32.xlu0 %v2084_v17, %s1919_s26  ;;  %666 = vrot.lane.b32.xlu1 %v2086_v18, %s1919_s26  ;;  %s469_s26 = sand.u32 1, %s1904_s30  }
 0x15f   : > { %1673 = vmatprep.subr.bf16.mxu1 %v1914_v1  ;;  %s1579_s27 = sshll.u32 %s469_s26, 3  ;;  %s1491_s28 = scalar_lea.sflag [#allocation3], %s469_s26 }
 0x160   : > { %s471_s25 = scalar_lea.vmem [#allocation2], %s1579_s27 }
 0x161   : > { %s1504_s1 = sshll.u32 %s471_s25, 4  ;;  %s1505_s1 = int_to_ptr.vmem [resolvable:$true] %s1504_s1 }
 0x162   : > { %s1852_s0 = scalar_lea.vmem %s1505_s1, 128  ;;  %p1859_p0 = scmp.lt.s32.totalorder %s1505_s1, %s1857_s21 }
 0x163   : > { %p1853_p11 = scmp.ne.s32.totalorder %s1505_s1, %s1852_s0 }
 0x164   : > { %1670 = vmatmul.mubr.msk.bf16.vlgmr.msra.gmra.mxu1 %vm569_vm2, %v2078_v10 }
 0x165   : > { %1675 = vmatprep.mubr.msk.bf16.mxu1 %vm1915_vm0, %v1914_v1  ;;  %p1854_p12 = pnand %p1853_p11, %p2036_p5 }
 0x167   : > { %p1855_p13 = pneg %p1854_p12 }
 0x1cc   : > { %v618_v20 = vpop.permute.xlu0 %617 }
 0x1cd   : > { %v623_v21 = vsel %vm569_vm2, %v618_v20, 0 }
 0x1ce   : > { %1674 = vmatpush3.bf16.xpose.msra.mxu1 %v623_v21 }
 0x1cf   : > { %1679 = vmatprep.subr.bf16.mxu1 %v1914_v1 }
 0x1d0   : > { %v716_v22 = vpop.permute.xlu0 %715  ;;  %v667_v24 = vpop.permute.xlu1 %666 }
 0x1d1   : > { %v721_v23 = vsel %vm569_vm2, %v716_v22, 0  ;;  %v672_v25 = vsel %vm569_vm2, %v667_v24, 0 }
 0x1d2   : > { %1686 = vmatpush3.bf16.xpose.msra.mxu0 %v721_v23 }
 0x1d3   : > { %1697 = vmatprep.subr.bf16.mxu0 %v1914_v1 }
 0x1d5   : > { %1676 = vmatmul.mubr.msk.bf16.vlgmr.msra.gmra.mxu1 %vm569_vm2, %v2081_v14 }
 0x1d6   : > { %1680 = vmatpush3.bf16.xpose.msra.mxu1 %v672_v25  ;;  %1681 = vmatprep.mubr.msk.bf16.mxu1 %vm1915_vm0, %v1914_v1 }
 0x1d7   : > { %1691 = vmatprep.subr.bf16.mxu1 %v1914_v1 }
 0x1d9   : > { %1688 = vmatmul.mubr.msk.bf16.vlgmr.msra.gmra.mxu0 %vm569_vm2, %v2084_v17 }
 0x1da   : > { %1699 = vmatprep.mubr.msk.bf16.mxu0 %vm1915_vm0, %v1914_v1 }
 0x1dd   : > { %1682 = vmatmul.mubr.msk.bf16.vlgmr.msra.gmra.mxu1 %vm569_vm2, %v2086_v18 }
 0x1de   : > { %1693 = vmatprep.mubr.msk.bf16.mxu1 %vm1915_vm0, %v1914_v1 }
 0x224   : > { %v610_v30 = vpop.f32.mrf.mxu1 }
 0x225   : > { %v763_v32 = vmul.f32 0.35355338, %v610_v30 }
 0x226   : > { %v1671_v33 = vpop.f32.mrf.mxu1 }
 0x227   : > { %v774_v34 = vsel %vm2118_vm4, -1e+09, %v763_v32 }
 0x228   : > { %v613_v35 = vpop.f32.mrf.mxu1  ;;  %v778_v36 = vsel %vm569_vm2, %v774_v34, -inf }
 0x229   : > { %779 = vmax.xlane.f32.xlu1 %v778_v36 }
 0x22a   : > { %v1672_v37 = vpop.f32.mrf.mxu1 }
 0x295   : > { %v659_v38 = vpop.f32.mrf.mxu1 }
 0x296   : > { %v764_v39 = vmul.f32 0.35355338, %v659_v38  ;;  %v1023_v38 = vld [vmem:[%s2330_s4] sm:$0xf] }
 0x297   : > { %v1677_v40 = vpop.f32.mrf.mxu1 }
 0x298   : > { %v775_v41 = vsel %vm2118_vm4, -1e+09, %v764_v39  ;;  %v1024_v40 = vld [vmem:[%s2330_s4 + $0x4] sm:$0xf] }
 0x299   : > { %v662_v42 = vpop.f32.mrf.mxu1  ;;  %v757_v43 = vpop.f32.mrf.mxu0  ;;  %v781_v44 = vsel %vm569_vm2, %v775_v41, -inf }
 0x29a   : > { %v766_v45 = vmul.f32 0.35355338, %v757_v43  ;;  %782 = vmax.xlane.f32.xlu0 %v781_v44  ;;  %v1031_v43 = vsel %vm831_vm5, %v1023_v38, 0  ;;  %v1077_v44 = vsel %vm831_vm5, %v1024_v40, 0  ;;  %v1817_v40 = vld [vmem:[%s2310_s8] sm:$0xff]  }
 0x29b   : > { %v1678_v46 = vpop.f32.mrf.mxu1  ;;  %v1689_v47 = vpop.f32.mrf.mxu0 }
 0x29c   : > { %v777_v48 = vsel %vm2118_vm4, -1e+09, %v766_v45  ;;  %v1025_v45 = vld [vmem:[%s2330_s4 + $0x8] sm:$0xf] }
 0x29d   : > { %v708_v49 = vpop.f32.mrf.mxu1  ;;  %v760_v50 = vpop.f32.mrf.mxu0  ;;  %v787_v51 = vsel %vm569_vm2, %v777_v48, -inf }
 0x29e   : > { %v765_v52 = vmul.f32 0.35355338, %v708_v49  ;;  %788 = vmax.xlane.f32.xlu1 %v787_v51 }
 0x29f   : > { %v1683_v53 = vpop.f32.mrf.mxu1  ;;  %v1690_v54 = vpop.f32.mrf.mxu0 }
 0x2a0   : > { %v776_v55 = vsel %vm2118_vm4, -1e+09, %v765_v52  ;;  %v1026_v52 = vld [vmem:[%s2330_s4 + $0xc] sm:$0xf] }
 0x2a1   : > { %v711_v56 = vpop.f32.mrf.mxu1  ;;  %v784_v57 = vsel %vm569_vm2, %v776_v55, -inf }
 0x2a2   : > { %785 = vmax.xlane.f32.xlu0 %v784_v57 }
 0x2a3   : > { %v1684_v58 = vpop.f32.mrf.mxu1 }
 0x2af   : > { %875 = vrot.lane.b32.xlu1 %v2081_v14, %s1921_s18 }
 0x2b2   : > { %v780_v59 = vpop.xlane.xlu1 %779 }
 0x2b3   : > { %v790_v60 = vsub.f32 %v774_v34, %v780_v59 }
 0x2b5   : > { %v794_v61 = vmul.f32 1.442695, %v790_v60 }
 0x2b7   : > { %1826 = vpow2.f32 %v794_v61 }
 0x2c4   : > { %v1827_v62 = vpop.eup %1826 }
 0x2c5   : > { %v802_v63 = vsel %vm569_vm2, %v1827_v62, 0.0 }
 0x2c6   : > { %803 = vadd.xlane.f32.xlu0 %v802_v63 }
 0x2dc   : > { %826 = vrot.lane.b32.xlu0 %v2078_v10, %s1921_s18 }
 0x323   : > { %v783_v0 = vpop.xlane.xlu0 %782 }
 0x324   : > { %v791_v2 = vsub.f32 %v775_v41, %v783_v0 }
 0x326   : > { %v796_v4 = vmul.f32 1.442695, %v791_v2 }
 0x327   : > { %v789_v5 = vpop.xlane.xlu1 %788 }
 0x328   : > { %1828 = vpow2.f32 %v796_v4  ;;  %v793_v6 = vsub.f32 %v777_v48, %v789_v5  ;;  %v1123_v48 = vsel %vm831_vm5, %v1025_v45, 0 }
 0x32a   : > { %v800_v7 = vmul.f32 1.442695, %v793_v6 }
 0x32b   : > { %v876_v8 = vpop.permute.xlu1 %875  ;;  %v786_v9 = vpop.xlane.xlu0 %785 }
 0x32c   : > { %1830 = vpow2.f32 %v800_v7  ;;  %v881_v11 = vsel %vm831_vm5, %v876_v8, 0  ;;  %v792_v12 = vsub.f32 %v776_v55, %v786_v9  ;;  %v1169_v55 = vsel %vm831_vm5, %v1026_v52, 0 }
 0x32d   : > { %1698 = vmatpush3.bf16.msra.mxu0 %v881_v11 }
 0x32e   : > { %v798_v13 = vmul.f32 1.442695, %v792_v12  ;;  %1709 = vmatprep.subr.bf16.mxu0 %v1914_v1 }
 0x330   : > { %1832 = vpow2.f32 %v798_v13 }
 0x335   : > { %v1829_v10 = vpop.eup %1828 }
 0x336   : > { %v805_v14 = vsel %vm569_vm2, %v1829_v10, 0.0 }
 0x337   : > { %806 = vadd.xlane.f32.xlu1 %v805_v14 }
 0x339   : > { %v1831_v15 = vpop.eup %1830 }
 0x33a   : > { %v811_v16 = vsel %vm569_vm2, %v1831_v15, 0.0 }
 0x33b   : > { %812 = vadd.xlane.f32.xlu1 %v811_v16 }
 0x33d   : > { %v1833_v19 = vpop.eup %1832 }
 0x33e   : > { %v808_v20 = vsel %vm569_vm2, %v1833_v19, 0.0 }
 0x33f   : > { %809 = vadd.xlane.f32.xlu0 %v808_v20 }
 0x34c   : > { %923 = vrot.lane.b32.xlu1 %v2086_v18, %s1921_s18 }
 0x34f   : > { %v804_v21 = vpop.xlane.xlu0 %803 }
 0x350   : > { %1834 = vrcp.f32 %v804_v21 }
 0x353   : > { %v827_v22 = vpop.permute.xlu0 %826 }
 0x354   : > { %v833_v23 = vsel %vm831_vm5, %v827_v22, 0 }
 0x355   : > { %971 = vrot.lane.b32.xlu0 %v2084_v17, %s1921_s18  ;;  %1692 = vmatpush3.bf16.msra.mxu1 %v833_v23  ;;  %s1617_s18 = sshll.u32 %s2019_s17, 7  ;;  %s1858_s17 = scalar_lea.vmem %s1857_s21, 256 }
 0x356   : > { %1703 = vmatprep.subr.bf16.mxu1 %v1914_v1  ;;  %s1502_s4 = scalar_lea.hbm %s2316_s14, %s1617_s18  ;;  %p1860_p1 = scmp.lt.s32.totalorder %s1858_s17, %s1852_s0 }
 0x358   : > { %p1861_p2 = por %p1860_p1, %p1859_p0 }
 0x35a   : > { %p1862_p3 = pnand %p1861_p2, %p1855_p13 }
 0x35d   : > { %v1835_v24 = vpop.eup %1834 }
 0x35e   : > { %v818_v25 = vmul.f32 %v1835_v24, %v1827_v62 }
 0x360   : > { %v822_v26 = vpack.c.bf16 %v818_v25, %v818_v25 }
 0x362   : > { %1694 = vmatmul.mubr.msk.bf16.vlgmr.msra.gmra.mxu1 %vm569_vm2, %v822_v26 }
 0x363   : > { %1705 = vmatprep.mubr.msk.bf16.mxu1 %vm1915_vm0, %v1914_v1 }
 0x3c0   : > { %v807_v18 = vpop.xlane.xlu1 %806 }
 0x3c1   : > { %1836 = vrcp.f32 %v807_v18  ;;  %v1598_v18 = vld [vmem:[%s2307_s5] ss:$0 sm:$0xff] }
 0x3c4   : > { %v813_v27 = vpop.xlane.xlu1 %812 }
 0x3c5   : > { %1838 = vrcp.f32 %v813_v27 }
 0x3c8   : > { %v924_v28 = vpop.permute.xlu1 %923  ;;  %v810_v29 = vpop.xlane.xlu0 %809 }
 0x3c9   : > { %v929_v30 = vsel %vm831_vm5, %v924_v28, 0  ;;  %1840 = vrcp.f32 %v810_v29 }
 0x3ca   : > { %1704 = vmatpush3.bf16.msra.mxu1 %v929_v30 }
 0x3cb   : > { %1715 = vmatprep.subr.bf16.mxu1 %v1914_v1 }
 0x3cc   : > { %v972_v32 = vpop.permute.xlu0 %971 }
 0x3cd   : > { %v977_v35 = vsel %vm831_vm5, %v972_v32, 0 }
 0x3ce   : > { %v1837_v17 = vpop.eup %1836 }
 0x3cf   : > { %v819_v31 = vmul.f32 %v1837_v17, %v1829_v10 }
 0x3d1   : > { %v823_v33 = vpack.c.bf16 %v819_v31, %v819_v31 }
 0x3d2   : > { %v1839_v34 = vpop.eup %1838 }
 0x3d3   : > { %1700 = vmatmul.mubr.msk.bf16.vlgmr.msra.gmra.mxu0 %vm569_vm2, %v823_v33  ;;  %v821_v36 = vmul.f32 %v1839_v34, %v1831_v15 }
 0x3d4   : > { %1710 = vmatpush3.bf16.msra.mxu0 %v977_v35  ;;  %1711 = vmatprep.mubr.msk.bf16.mxu0 %vm1915_vm0, %v1914_v1 }
 0x3d5   : > { %1721 = vmatprep.subr.bf16.mxu0 %v1914_v1  ;;  %v825_v42 = vpack.c.bf16 %v821_v36, %v821_v36 }
 0x3d6   : > { %v1841_v37 = vpop.eup %1840 }
 0x3d7   : > { %v820_v39 = vmul.f32 %v1841_v37, %v1833_v19 }
 0x3d9   : > { %v824_v41 = vpack.c.bf16 %v820_v39, %v820_v39  ;;  %v1816_v39 = vld [vmem:[%s2310_s8 + $0x8] sm:$0xff]  }
 0x3db   : > { %1706 = vmatmul.mubr.msk.bf16.vlgmr.msra.gmra.mxu1 %vm569_vm2, %v824_v41  ;;  %1712 = vmatmul.mubr.msk.bf16.vlgmr.msra.gmra.mxu0 %vm569_vm2, %v825_v42 }
 0x3dc   : > { %1716 = vmatpush3.bf16.msra.mxu1 %v1031_v43  ;;  %1717 = vmatprep.mubr.msk.bf16.mxu1 %vm1915_vm0, %v1914_v1 }
 0x3dd   : > { %1722 = vmatpush3.bf16.msra.mxu0 %v1077_v44  ;;  %1723 = vmatprep.mubr.msk.bf16.mxu0 %vm1915_vm0, %v1914_v1 }
 0x3de   : > { %1727 = vmatprep.subr.bf16.mxu1 %v1914_v1  ;;  %1733 = vmatprep.subr.bf16.mxu0 %v1914_v1 }
 0x422   : > { %v869_v46 = vpop.f32.mrf.mxu1 }
 0x423   : > { %v1019_v47 = vpack.c.bf16 %v869_v46, %v869_v46 }
 0x424   : > { %v1695_v49 = vpop.f32.mrf.mxu1 }
 0x425   : > { %1718 = vmatmul.mubr.msk.bf16.vlgmr.msra.gmra.mxu1 %vm569_vm2, %v1019_v47 }
 0x426   : > { %v872_v50 = vpop.f32.mrf.mxu1  ;;  %1728 = vmatpush3.bf16.msra.mxu1 %v1123_v48  ;;  %1729 = vmatprep.mubr.msk.bf16.mxu1 %vm1915_vm0, %v1914_v1  ;;  %v1599_v48 = vld [vmem:[%s2308_s6] ss:$0 sm:$0xff] }
 0x427   : > { %1739 = vmatprep.subr.bf16.mxu1 %v1914_v1 }
 0x428   : > { %v1696_v51 = vpop.f32.mrf.mxu1 }
 0x429   : > { %v1600_v51 = vld [vmem:[%s2309_s7] ss:$0 sm:$0xff] }
 0x493   : > { %v917_v53 = vpop.f32.mrf.mxu0 }
 0x494   : > { %v1020_v54 = vpack.c.bf16 %v917_v53, %v917_v53 }
 0x495   : > { %v1701_v56 = vpop.f32.mrf.mxu0 }
 0x496   : > { %1724 = vmatmul.mubr.msk.bf16.vlgmr.msra.gmra.mxu0 %vm569_vm2, %v1020_v54  ;;  %v1819_v56 = vld [vmem:[%s2312_s10 + $0x30] sm:$0xff]  }
 0x497   : > { %v920_v57 = vpop.f32.mrf.mxu0  ;;  %1734 = vmatpush3.bf16.msra.mxu0 %v1169_v55  ;;  %1735 = vmatprep.mubr.msk.bf16.mxu0 %vm1915_vm0, %v1914_v1  ;;  %v1818_v55 = vld [vmem:[%s2312_s10 + $0x38] sm:$0xff]  }
 0x498   : > { %1747 = vmatprep.subr.bf16.mxu0 %v1914_v1  ;;  %v1820_v57 = vld [vmem:[%s2312_s10 + $0x28] sm:$0xff]  }
 0x499   : > { %v1702_v58 = vpop.f32.mrf.mxu0 }
 0x49a   : > { %v1821_v58 = vld [vmem:[%s2312_s10 + $0x20] sm:$0xff]  }
 0x49b   : > { %v965_v59 = vpop.f32.mrf.mxu1  ;;  %v1013_v60 = vpop.f32.mrf.mxu0 }
 0x49c   : > { %v1021_v61 = vpack.c.bf16 %v965_v59, %v965_v59  ;;  %v1022_v62 = vpack.c.bf16 %v1013_v60, %v1013_v60  ;;  %v1822_v59 = vld [vmem:[%s2312_s10 + $0x18] sm:$0xff]   ;;  %v1823_v60 = vld [vmem:[%s2312_s10 + $0x10] sm:$0xff]  }
 0x49d   : > { %v1707_v63 = vpop.f32.mrf.mxu1  ;;  %v1713_v0 = vpop.f32.mrf.mxu0 }
 0x49e   : > { %1730 = vmatmul.mubr.msk.bf16.vlgmr.msra.gmra.mxu1 %vm569_vm2, %v1021_v61  ;;  %1736 = vmatmul.mubr.msk.bf16.vlgmr.msra.gmra.mxu0 %vm569_vm2, %v1022_v62  ;;  %v1824_v61 = vld [vmem:[%s2312_s10 + $0x8] sm:$0xff]   ;;  %v1825_v62 = vld [vmem:[%s2312_s10] sm:$0xff]  }
 0x49f   : > { %v968_v2 = vpop.f32.mrf.mxu1  ;;  %v1016_v4 = vpop.f32.mrf.mxu0  ;;  %1743 = vmatprep.mubr.msk.bf16.mxu1 %vm1915_vm0, %v1914_v1  ;;  %1763 = vmatprep.mubr.msk.bf16.mxu0 %vm1915_vm0, %v1914_v1  ;;  %v1601_v63 = vld [vmem:[%s2311_s9] ss:$0 sm:$0xff] }
 0x4a0   : > { %1740 = vmatpush3.bf16.msra.mxu1 %v1816_v39  ;;  %1748 = vmatpush3.bf16.msra.mxu0 %v1818_v55 }
 0x4a1   : > { %v1708_v5 = vpop.f32.mrf.mxu1  ;;  %v1714_v6 = vpop.f32.mrf.mxu0  ;;  %1741 = vmatprep.subr.bf16.mxu1 %v1914_v1  ;;  %1749 = vmatprep.subr.bf16.mxu0 %v1914_v1 }
 0x4a4   : > { %1742 = vmatpush3.bf16.msra.mxu1 %v1817_v40  ;;  %1750 = vmatpush3.bf16.msra.mxu0 %v1819_v56  ;;  %v1615_v40 = vld [vmem:[%s2315_s13] ss:$0 sm:$0xff] }
 0x4a5   : > { %1751 = vmatprep.subr.bf16.mxu0 %v1914_v1 }
 0x4a8   : > { %1752 = vmatpush3.bf16.msra.mxu0 %v1820_v57 }
 0x4a9   : > { %1753 = vmatprep.subr.bf16.mxu0 %v1914_v1 }
 0x4ac   : > { %1754 = vmatpush3.bf16.msra.mxu0 %v1821_v58 }
 0x4ad   : > { %1755 = vmatprep.subr.bf16.mxu0 %v1914_v1 }
 0x4b0   : > { %1756 = vmatpush3.bf16.msra.mxu0 %v1822_v59 }
 0x4b1   : > { %1757 = vmatprep.subr.bf16.mxu0 %v1914_v1 }
 0x4b4   : > { %1758 = vmatpush3.bf16.msra.mxu0 %v1823_v60 }
 0x4b5   : > { %1759 = vmatprep.subr.bf16.mxu0 %v1914_v1 }
 0x4b8   : > { %1760 = vmatpush3.bf16.msra.mxu0 %v1824_v61 }
 0x4b9   : > { %1761 = vmatprep.subr.bf16.mxu0 %v1914_v1 }
 0x4bc   : > { %1762 = vmatpush3.bf16.msra.mxu0 %v1825_v62 }
 0x4e5   : > { %v1067_v7 = vpop.f32.mrf.mxu1 }
 0x4e6   : > { %v1211_v16 = vsel %vm508_vm1, %v1067_v7, 0.0 }
 0x4e7   : > { %v1719_v8 = vpop.f32.mrf.mxu1 }
 0x4e9   : > { %v1070_v9 = vpop.f32.mrf.mxu1 }
 0x4eb   : > { %v1720_v11 = vpop.f32.mrf.mxu1 }
 0x556   : > { %v1113_v12 = vpop.f32.mrf.mxu0 }
 0x557   : > { %v1212_v14 = vsel %vm508_vm1, %v1113_v12, 0.0 }
 0x558   : > { %v1725_v13 = vpop.f32.mrf.mxu0  ;;  %v1213_v19 = vadd.f32 %v1212_v14, %v1211_v16  ;;  %v1605_v16 = vld [vmem:[%s2313_s11] ss:$0 sm:$0xff] }
 0x55a   : > { %v1116_v10 = vpop.f32.mrf.mxu0 }
 0x55c   : > { %v1726_v15 = vpop.f32.mrf.mxu0 }
 0x55e   : > { %v1159_v20 = vpop.f32.mrf.mxu1  ;;  %v1205_v21 = vpop.f32.mrf.mxu0 }
 0x55f   : > { %v1214_v22 = vsel %vm508_vm1, %v1159_v20, 0.0  ;;  %v1216_v26 = vsel %vm508_vm1, %v1205_v21, 0.0 }
 0x560   : > { %v1215_v23 = vadd.f32 %v1214_v22, %v1213_v19  ;;  %v1731_v24 = vpop.f32.mrf.mxu1  ;;  %v1737_v25 = vpop.f32.mrf.mxu0 }
 0x562   : > { %v1217_v27 = vadd.f32 %v1216_v26, %v1215_v23  ;;  %v1162_v28 = vpop.f32.mrf.mxu1  ;;  %v1208_v29 = vpop.f32.mrf.mxu0 }
 0x564   : > { %v1225_v30 = vadd.f32 %v1598_v18, %v1217_v27  ;;  %v1732_v17 = vpop.f32.mrf.mxu1  ;;  %v1738_v31 = vpop.f32.mrf.mxu0 }
 0x566   : > { %v1226_v32 = vadd.f32 %v1225_v30, %v2068_v3 }
 0x568   : > { %v1229_v33 = vsel %vm508_vm1, %v1226_v32, 0.0 }
 0x569   : > { %1230 = vadd.xlane.f32.xlu1 %v1229_v33 }
 0x5f2   : > { %v1231_v34 = vpop.xlane.xlu1 %1230 }
 0x5f3   : > { %v1233_v35 = vmul.f32 0.03125, %v1231_v34 }
 0x5f5   : > { %v1234_v36 = vsub.f32 %v1226_v32, %v1233_v35 }
 0x5f7   : > { %v1235_v37 = vmul.f32 %v1234_v36, %v1234_v36  ;;  %v1253_v49 = vmul.f32 %v1599_v48, %v1234_v36 }
 0x5f9   : > { %v1236_v38 = vsel %vm508_vm1, %v1235_v37, 0.0  ;;  %v1614_v37 = vld [vmem:[%s2314_s12] ss:$0 sm:$0xff] }
 0x5fa   : > { %1237 = vadd.xlane.f32.xlu0 %v1236_v38 }
 0x683   : > { %v1238_v3 = vpop.xlane.xlu0 %1237 }
 0x684   : > { %v1239_v41 = vmul.f32 0.032258064, %v1238_v3 }
 0x686   : > { %1842 = vrsqrt.f32 %v1239_v41  ;;  %vm1242_vm6 = vcmp.eq.f32.partialorder %v1239_v41, inf  ;;  %v1245_v44 = vand.u32 2147483648, %v1239_v41  ;;  %vm1244_vm7 = vcmp.eq.f32.partialorder %v1239_v41, 0.0 }
 0x693   : > { %v1843_v42 = vpop.eup %1842 }
 0x694   : > { %v1241_v43 = vmul.f32 %v1843_v42, %v1239_v41 }
 0x696   : > { %v1243_v45 = vsel %vm1242_vm6, %v1239_v41, %v1241_v43 }
 0x697   : > { %v1246_v46 = vsel %vm1244_vm7, %v1245_v44, %v1243_v45 }
 0x698   : > { %v1254_v47 = vadd.f32 1e-06, %v1246_v46 }
 0x69a   : > { %1844 = vrcp.f32 %v1254_v47 }
 0x6a7   : > { %v1845_v50 = vpop.eup %1844 }
 0x6a8   : > { %v1256_v52 = vmul.f32 %v1845_v50, %v1253_v49 }
 0x6aa   : > { %v1263_v53 = vadd.f32 %v1600_v51, %v1256_v52 }
 0x6ac   : > { %v1264_v54 = vpack.c.bf16 %v1263_v53, %v1263_v53 }
 0x6ae   : > { %1744 = vmatmul.mubr.msk.bf16.vlgmr.msra.gmra.mxu1 %vm508_vm1, %v1264_v54 }
 0x76e   : > { %v1325_v0 = vpop.f32.mrf.mxu1 }
 0x76f   : > { %v1326_v2 = vadd.f32 %v1601_v63, %v1325_v0 }
 0x770   : > { %v1745_v4 = vpop.f32.mrf.mxu1 }
 0x771   : > { %v1332_v5 = vmul.f32 %v1326_v2, %v1326_v2  ;;  %v1331_v10 = vmul.f32 0.5, %v1326_v2 }
 0x772   : > { %v1328_v6 = vpop.f32.mrf.mxu1 }
 0x773   : > { %v1333_v7 = vmul.f32 %v1332_v5, %v1326_v2 }
 0x774   : > { %v1746_v8 = vpop.f32.mrf.mxu1 }
 0x775   : > { %v1334_v9 = vmul.f32 0.044715, %v1333_v7 }
 0x777   : > { %v1335_v11 = vadd.f32 %v1334_v9, %v1326_v2 }
 0x779   : > { %v1336_v12 = vmul.f32 0.7978846, %v1335_v11 }
 0x77b   : > { %1846 = vtanh.f32 %v1336_v12 }
 0x788   : > { %v1847_v13 = vpop.eup %1846 }
 0x789   : > { %v1338_v14 = vadd.f32 1.0, %v1847_v13 }
 0x78b   : > { %v1339_v1 = vmul.f32 %v1338_v14, %v1331_v10 }
 0x78d   : > { %v1340_v15 = vpack.c.bf16 %v1339_v1, %v1339_v1 }
 0x78f   : > { %1764 = vmatmul.mubr.bf16.vlgmr.msra.gmra.mxu0 %v1340_v15 }
 0x84f   : > { %v1446_v19 = vpop.f32.mrf.mxu0 }
 0x850   : > { %v1447_v20 = vadd.f32 %v1605_v16, %v1446_v19 }
 0x851   : > { %v1765_v21 = vpop.f32.mrf.mxu0 }
 0x852   : > { %v1452_v22 = vadd.f32 %v1447_v20, %v1263_v53 }
 0x853   : > { %v1449_v23 = vpop.f32.mrf.mxu0 }
 0x854   : > { %v1455_v24 = vsel %vm508_vm1, %v1452_v22, 0.0 }
 0x855   : > { %1456 = vadd.xlane.f32.xlu0 %v1455_v24  ;;  %v1766_v25 = vpop.f32.mrf.mxu0 }
 0x8de   : > { %v1457_v26 = vpop.xlane.xlu0 %1456 }
 0x8df   : > { %v1458_v18 = vmul.f32 0.03125, %v1457_v26 }
 0x8e1   : > { %v1459_v27 = vsub.f32 %v1452_v22, %v1458_v18 }
 0x8e3   : > { %v1460_v28 = vmul.f32 %v1459_v27, %v1459_v27  ;;  %v1478_v38 = vmul.f32 %v1614_v37, %v1459_v27 }
 0x8e5   : > { %v1461_v29 = vsel %vm508_vm1, %v1460_v28, 0.0 }
 0x8e6   : > { %1462 = vadd.xlane.f32.xlu1 %v1461_v29 }
 0x96f   : > { %v1463_v30 = vpop.xlane.xlu1 %1462 }
 0x970   : > { %v1464_v17 = vmul.f32 0.032258064, %v1463_v30 }
 0x972   : > { %1848 = vrsqrt.f32 %v1464_v17  ;;  %vm1467_vm8 = vcmp.eq.f32.partialorder %v1464_v17, inf  ;;  %v1470_v33 = vand.u32 2147483648, %v1464_v17  ;;  %vm1469_vm9 = vcmp.eq.f32.partialorder %v1464_v17, 0.0 }
 0x97f   : > { %v1849_v31 = vpop.eup %1848 }
 0x980   : > { %v1466_v32 = vmul.f32 %v1849_v31, %v1464_v17 }
 0x982   : > { %v1468_v34 = vsel %vm1467_vm8, %v1464_v17, %v1466_v32 }
 0x983   : > { %v1471_v35 = vsel %vm1469_vm9, %v1470_v33, %v1468_v34 }
 0x984   : > { %v1479_v36 = vadd.f32 1e-06, %v1471_v35 }
 0x986   : > { %1850 = vrcp.f32 %v1479_v36 }
 0x993   : > { %v1851_v39 = vpop.eup %1850 }
 0x994   : > { %v1481_v3 = vmul.f32 %v1851_v39, %v1478_v38 }
 0x996   : > { %v1488_v41 = vadd.f32 %v1615_v40, %v1481_v3 }
 0x998   : > { %1489 = vst.msk [vmem:[%s471_s25] sm:$0xff] %vm508_vm1, %v1488_v41 }
 0x999   : > { %1865 = shalt.err (!%p1862_p3)
}
 0x99a   : > { %s1866_s2 = scalar_lea.hbm %s1502_s4, 128  ;;  %s1870_s27 = scalar_lea.hbm %s2316_s14, 256 }
 0x99b   : > { %p1867_p4 = scmp.ne.s32.totalorder %s1502_s4, %s1866_s2  ;;  %p1871_p9 = scmp.lt.s32.totalorder %s1502_s4, %s2316_s14 }
 0x99c   : > { %p1872_p10 = scmp.lt.s32.totalorder %s1870_s27, %s1866_s2 }
 0x99d   : > { %p1868_p7 = pnand %p1867_p4, %p2036_p5 }
 0x99e   : > { %p1873_p11 = por %p1872_p10, %p1871_p9 }
 0x99f   : > { %p1869_p8 = pneg %p1868_p7 }
 0x9a1   : > { %p1874_p12 = pnand %p1873_p11, %p1869_p8 }
 0x9a3   : > { %1877 = shalt.err (!%p1874_p12)
}
 0x9a4   : > { %1767 = dma.vmem_to_hbm [thread:$0]  (%p2036_p5), %s1505_s1, 128, %s1502_s4, %s1491_s28  }
 0x9a5 PF: > { %p1773_p13 = scmp.ge.s32.totalorder %s1912_s16, 2  ;;  %s1516_s0 = sand.u32 1, %s1900_s29  }
 0x9a6   : > { %s1517_s20 = scalar_lea.sflag [#allocation3], %s1516_s0 }
 0x9a7   : > { %p1770_p0 = pnand %p1773_p13, %p2040_p6 }
 0x9a9   : > { %p1771_p1 = pneg %p1770_p0 }
 0x9ab   : > { %1895 = dma.done.wait (%p1771_p1), %s1517_s20, 128  }
 0x9ac   : > { %1897 = vsyncadd (%p1771_p1), %s1517_s20, 4294967168  ;;  %p24_p2 = scmp.ge.s32.totalorder %s2023_s19, 4   ;;  %s2331_s29 = smov %s1904_s30 }
 0x9ad   : > { %s2332_s30 = smov %s1908_s15  ;;  %s2333_s15 = smov %s2034_s22 }
 0x9ae   : > { %s2334_s16 = smov %s2023_s19  ;;  %26 = sbr.rel (!%p24_p2) target bundleno = 9 (0x9), region = 114 }
 0x9b3   :  { %1522 = vsyncpa [#allocation3], 1 }
 0x9b4   :  { %1524 = vsyncpa [#allocation3 + $0x1], 1 }

</bundles_post_ra>
